<compile_context>
chip_gen: v6e
topology: v6e:2x2x1
jax: 0.10.0
libtpu: 0.0.40
codegen_flags: <defaults>
</compile_context>

<pallas_src>
import functools

import jax
import jax.numpy as jnp
import numpy as np
from jax.experimental import pallas as pl
from jax.experimental.pallas import tpu as pltpu


def _round_up(x: int, m: int) -> int:
    return (x + m - 1) // m * m


def fmr_kernel(xp_ref, z_ref, fw_ref, fb_ref, veff_ref, mask_ref,
               out_ref, recon_ref, *, tb, batch, f_pad):
    # xp_ref   : [TB, D]            bf16  batch tile of base-model features
    # z_ref    : [TB, F_pad]        f32   batch tile of fixed features (zero-padded cols)
    # fw_ref   : [D, F_pad + O_pad] bf16  fused [U^T | W^T], zero-padded, resident
    # fb_ref   : [1, F_pad + O_pad] f32   fused [U_b | W_b], zero-padded, resident
    # veff_ref : [F_pad, O_pad]     bf16  V^T with mask folded in, resident
    # mask_ref : [1, F_pad]         f32
    # out_ref  : [TB, O_pad]        f32
    # recon_ref: [1, 8, 128]        f32   per-tile partial sum (broadcast into block)
    xp = xp_ref[...]
    z = z_ref[...]
    mask = mask_ref[...]

    # One fused MXU matmul for both U_layer and W_layer (shared LHS),
    # bf16 operands, f32 accumulation, one bias add.
    fused = jnp.dot(xp, fw_ref[...], preferred_element_type=jnp.float32) + fb_ref[...]
    u_out = fused[:, :f_pad]        # [TB, F_pad]   U_layer(xp)
    x_pred = fused[:, f_pad:]       # [TB, O_pad]   W_layer(xp)

    # z_pred = V_layer(z * mask); mask already folded into veff.
    z_pred = jnp.dot(z.astype(jnp.bfloat16), veff_ref[...],
                     preferred_element_type=jnp.float32)
    out_ref[...] = (x_pred + z_pred).astype(out_ref.dtype)

    # Per-tile partial sum of ((z - U(xp)) * mask)^2, excluding padded batch rows.
    diff = (z - u_out) * mask
    row = jax.lax.broadcasted_iota(jnp.int32, (tb, 1), 0) + pl.program_id(0) * tb
    valid = (row < batch).astype(jnp.float32)
    part = jnp.sum(diff * diff * valid)
    recon_ref[...] = jnp.broadcast_to(part, recon_ref.shape).astype(jnp.float32)


@jax.jit
def fmr_forward(x, z, U_w, U_b, W_w, W_b, V_w, mask):
    """FMR forward. PyTorch-convention params: U_w [F, D], U_b [F], W_w [O, D],
    W_b [O], V_w [O, F], mask [F]. base_model is treated as identity (xp = x)."""
    xp = x
    B, D = xp.shape
    F_ = U_w.shape[0]
    O = W_w.shape[0]

    f32, bf16 = jnp.float32, jnp.bfloat16

    # Lane-dense padding of feature dims (multiples of 128).
    F_pad = _round_up(F_, 128)
    O_pad = _round_up(O, 128)

    # Batch tile: 512 rows (multiple of 256 -> clean MXU passes on v6e/v7x, fits
    # v7x's 64 MiB VMEM with large margin), or the sublane-rounded batch if small.
    TB = 512 if B >= 512 else _round_up(B, 8)
    B_pad = _round_up(B, TB)
    n_tiles = B_pad // TB

    # ---- one-time parameter packing (cache at param-update time in production) ----
    uwT = jnp.zeros((D, F_pad), f32).at[:, :F_].set(U_w.T.astype(f32))
    wwT = jnp.zeros((D, O_pad), f32).at[:, :O].set(W_w.T.astype(f32))
    fused_w = jnp.concatenate([uwT, wwT], axis=1).astype(bf16)       # [D, F_pad+O_pad]
    fused_b = jnp.zeros((1, F_pad + O_pad), f32)
    fused_b = fused_b.at[0, :F_].set(U_b.astype(f32))
    fused_b = fused_b.at[0, F_pad:F_pad + O].set(W_b.astype(f32))

    mask_f = mask.astype(f32)
    veff = jnp.zeros((F_pad, O_pad), f32).at[:F_, :O].set(
        V_w.T.astype(f32) * mask_f[:, None])                          # fold mask into V
    veff = veff.astype(bf16)
    mask_pad = jnp.zeros((1, F_pad), f32).at[0, :F_].set(mask_f)

    # ---- activation padding (zero rows/cols; masked out of the recon sum) ----
    xp_pad = jnp.zeros((B_pad, D), bf16).at[:B, :].set(xp.astype(bf16))
    z_pad = jnp.zeros((B_pad, F_pad), f32).at[:B, :F_].set(z.astype(f32))

    kernel = functools.partial(fmr_kernel, tb=TB, batch=B, f_pad=F_pad)

    out_pad, recon_parts = pl.pallas_call(
        kernel,
        out_shape=(
            jax.ShapeDtypeStruct((B_pad, O_pad), f32),
            jax.ShapeDtypeStruct((n_tiles, 8, 128), f32),
        ),
        grid=(n_tiles,),
        in_specs=[
            pl.BlockSpec((TB, D), lambda i: (i, 0)),                  # xp tile
            pl.BlockSpec((TB, F_pad), lambda i: (i, 0)),              # z tile
            pl.BlockSpec((D, F_pad + O_pad), lambda i: (0, 0)),       # fused weight (resident)
            pl.BlockSpec((1, F_pad + O_pad), lambda i: (0, 0)),       # fused bias   (resident)
            pl.BlockSpec((F_pad, O_pad), lambda i: (0, 0)),           # V_eff        (resident)
            pl.BlockSpec((1, F_pad), lambda i: (0, 0)),               # mask         (resident)
        ],
        out_specs=(
            pl.BlockSpec((TB, O_pad), lambda i: (i, 0)),              # x_pred + z_pred
            pl.BlockSpec((1, 8, 128), lambda i: (i, 0, 0)),           # recon partial sums
        ),
        compiler_params=pltpu.CompilerParams(
            dimension_semantics=("parallel",),     # batch tiles are independent
            vmem_limit_bytes=32 * 1024 * 1024,
        ),
    )(xp_pad, z_pad, fused_w, fused_b, veff, mask_pad)

    out = out_pad[:B, :O]
    # Finalize recon: 0.5 * sum / (B * F) with the ORIGINAL element count.
    recon = 0.5 * jnp.sum(recon_parts[:, 0, 0]) / (B * F_)
    # reg_loss is batch-independent -> hoisted out of the tiled kernel; computed on
    # the original (unpadded) weights so the mean denominators are exact.
    reg = (jnp.mean(W_w.astype(f32) ** 2) + jnp.mean(V_w.astype(f32) ** 2)
           + jnp.mean(U_w.astype(f32) ** 2))
    return out, {"reg_loss": reg, "reconstruction_loss": recon}


def _reference(xp, z, U_w, U_b, W_w, W_b, V_w, mask):
    """Pure-JAX reference mirroring the PyTorch forward."""
    m = mask.reshape(1, -1)
    u_out = xp @ U_w.T + U_b
    recon = 0.5 * jnp.mean(((z - u_out) * m) ** 2)
    reg = jnp.mean(W_w ** 2) + jnp.mean(V_w ** 2) + jnp.mean(U_w ** 2)
    x_pred = xp @ W_w.T + W_b
    z_pred = (z * m) @ V_w.T
    return x_pred + z_pred, reg, recon


if __name__ == "__main__":
    # Small, deterministic shapes.
    B = 8                    # batch
    D = 32                   # base_model_feature_size
    F_ = 16                  # fixed_feature_size
    O = 8                    # output_size

    key = jax.random.PRNGKey(0)
    kx, kz, ku, kub, kw, kwb, kv = jax.random.split(key, 7)

    # base_model is identity: xp = x (x already carries base_model_feature_size).
    x = jax.random.normal(kx, (B, D), dtype=jnp.float32)
    z = jax.random.normal(kz, (B, F_), dtype=jnp.float32)

    U_w = jax.random.normal(ku, (F_, D), dtype=jnp.float32) * 0.1
    U_b = jax.random.normal(kub, (F_,), dtype=jnp.float32) * 0.1
    W_w = jax.random.normal(kw, (O, D), dtype=jnp.float32) * 0.1
    W_b = jax.random.normal(kwb, (O,), dtype=jnp.float32) * 0.1
    V_w = jax.random.normal(kv, (O, F_), dtype=jnp.float32) * 0.1
    # Mask with a couple of knocked-down features (mirrors knock_down()).
    mask = jnp.ones((F_,), dtype=jnp.float32).at[jnp.array([2, 5])].set(0.0)

    out, losses = fmr_forward(x, z, U_w, U_b, W_w, W_b, V_w, mask)
    out = jax.block_until_ready(out)
    reg = jax.block_until_ready(losses["reg_loss"])
    recon = jax.block_until_ready(losses["reconstruction_loss"])

    # Correctness check vs. plain-JAX f32 reference. Matmul operands are bf16 with
    # f32 accumulation, so tolerances are relaxed accordingly.
    ref_out, ref_reg, ref_recon = _reference(x, z, U_w, U_b, W_w, W_b, V_w, mask)
    assert np.allclose(np.asarray(out), np.asarray(ref_out), atol=3e-2, rtol=3e-2), \
        float(np.max(np.abs(np.asarray(out) - np.asarray(ref_out))))
    assert np.allclose(float(recon), float(ref_recon), atol=1e-3, rtol=3e-2)
    assert np.allclose(float(reg), float(ref_reg), atol=1e-6, rtol=1e-5)

    print("KERNEL_OK")
</pallas_src>

<mosaic_0001>
module attributes {stable_mosaic.version = 11 : i64} {
  func.func @fmr_kernel(%arg0: i32, %arg1: memref<8x32xbf16, #tpu.memory_space<vmem>>, %arg2: memref<8x128xf32, #tpu.memory_space<vmem>>, %arg3: memref<32x256xbf16, #tpu.memory_space<vmem>>, %arg4: memref<1x256xf32, #tpu.memory_space<vmem>>, %arg5: memref<128x128xbf16, #tpu.memory_space<vmem>>, %arg6: memref<1x128xf32, #tpu.memory_space<vmem>>, %arg7: memref<8x128xf32, #tpu.memory_space<vmem>>, %arg8: memref<1x8x128xf32, #tpu.memory_space<vmem>>) attributes {dimension_semantics = [#tpu.dimension_semantics<parallel>], iteration_bounds = array<i64: 1>, scalar_prefetch = 0 : i64, scratch_operands = 0 : i64, tpu.core_type = #tpu.core_type<tc>, window_params = [{transform_indices = @transform_0, window_bounds = array<i64: 8, 32>}, {transform_indices = @transform_1, window_bounds = array<i64: 8, 128>}, {pipeline_mode = #tpu.pipeline_mode<synchronous>, transform_indices = @transform_2, window_bounds = array<i64: 32, 256>}, {pipeline_mode = #tpu.pipeline_mode<synchronous>, transform_indices = @transform_3, window_bounds = array<i64: 1, 256>}, {pipeline_mode = #tpu.pipeline_mode<synchronous>, transform_indices = @transform_4, window_bounds = array<i64: 128, 128>}, {pipeline_mode = #tpu.pipeline_mode<synchronous>, transform_indices = @transform_5, window_bounds = array<i64: 1, 128>}, {transform_indices = @transform_6, window_bounds = array<i64: 8, 128>}, {transform_indices = @transform_7, window_bounds = array<i64: 1, 8, 128>}]} {
    %c0 = arith.constant 0 : index
    %c0_0 = arith.constant 0 : index
    %0 = vector.load %arg1[%c0, %c0_0] : memref<8x32xbf16, #tpu.memory_space<vmem>>, vector<8x32xbf16>
    %c0_1 = arith.constant 0 : index
    %c0_2 = arith.constant 0 : index
    %1 = vector.load %arg2[%c0_1, %c0_2] : memref<8x128xf32, #tpu.memory_space<vmem>>, vector<8x128xf32>
    %c0_3 = arith.constant 0 : index
    %c0_4 = arith.constant 0 : index
    %2 = vector.load %arg6[%c0_3, %c0_4] : memref<1x128xf32, #tpu.memory_space<vmem>>, vector<1x128xf32>
    %c0_5 = arith.constant 0 : index
    %c0_6 = arith.constant 0 : index
    %3 = vector.load %arg3[%c0_5, %c0_6] : memref<32x256xbf16, #tpu.memory_space<vmem>>, vector<32x256xbf16>
    %cst = arith.constant dense<0.000000e+00> : vector<8x256xf32>
    %4 = tpu.matmul %0, %3, %cst {dimension_numbers = #tpu.dot_dimension_numbers<[1], [0], [0], [1], [0, 0, 1, 1], [], []>} : vector<8x32xbf16>, vector<32x256xbf16>, vector<8x256xf32> -> vector<8x256xf32>
    %c0_7 = arith.constant 0 : index
    %c0_8 = arith.constant 0 : index
    %5 = vector.load %arg4[%c0_7, %c0_8] : memref<1x256xf32, #tpu.memory_space<vmem>>, vector<1x256xf32>
    %6 = vector.broadcast %5 : vector<1x256xf32> to vector<8x256xf32>
    %7 = arith.addf %4, %6 : vector<8x256xf32>
    %8 = vector.extract_strided_slice %7 {offsets = [0, 0], sizes = [8, 128], strides = [1, 1]} : vector<8x256xf32> to vector<8x128xf32>
    %9 = vector.extract_strided_slice %7 {offsets = [0, 128], sizes = [8, 128], strides = [1, 1]} : vector<8x256xf32> to vector<8x128xf32>
    %10 = arith.truncf %1 : vector<8x128xf32> to vector<8x128xbf16>
    %c0_9 = arith.constant 0 : index
    %c0_10 = arith.constant 0 : index
    %11 = vector.load %arg5[%c0_9, %c0_10] : memref<128x128xbf16, #tpu.memory_space<vmem>>, vector<128x128xbf16>
    %cst_11 = arith.constant dense<0.000000e+00> : vector<8x128xf32>
    %12 = tpu.matmul %10, %11, %cst_11 {dimension_numbers = #tpu.dot_dimension_numbers<[1], [0], [0], [1], [0, 0, 1, 1], [], []>} : vector<8x128xbf16>, vector<128x128xbf16>, vector<8x128xf32> -> vector<8x128xf32>
    %13 = arith.addf %9, %12 : vector<8x128xf32>
    %c0_12 = arith.constant 0 : index
    %c0_13 = arith.constant 0 : index
    %14 = vector.load %arg7[%c0_12, %c0_13] : memref<8x128xf32, #tpu.memory_space<vmem>>, vector<8x128xf32>
    tpu.vector_store %arg7[%c0_12, %c0_13], %13 {strides = array<i32>} : memref<8x128xf32, #tpu.memory_space<vmem>>, vector<8x128xf32>,
    %15 = arith.subf %1, %8 : vector<8x128xf32>
    %16 = vector.broadcast %2 : vector<1x128xf32> to vector<8x128xf32>
    %17 = arith.mulf %15, %16 : vector<8x128xf32>
    %18 = tpu.iota {dimensions = array<i32: 0>} : vector<8x1xi32>
    %c8_i32 = arith.constant 8 : i32
    %19 = arith.muli %arg0, %c8_i32 : i32
    %20 = vector.broadcast %19 : i32 to vector<8x1xi32>
    %21 = arith.addi %18, %20 : vector<8x1xi32>
    %c8_i32_14 = arith.constant 8 : i32
    %22 = vector.broadcast %c8_i32_14 : i32 to vector<8x1xi32>
    %23 = arith.cmpi slt, %21, %22 : vector<8x1xi32>
    %24 = arith.extui %23 : vector<8x1xi1> to vector<8x1xi32>
    %25 = arith.sitofp %24 : vector<8x1xi32> to vector<8x1xf32>
    %26 = arith.mulf %17, %17 : vector<8x128xf32>
    %27 = vector.broadcast %25 : vector<8x1xf32> to vector<8x128xf32>
    %28 = arith.mulf %26, %27 : vector<8x128xf32>
    %29 = vector.shape_cast %28 : vector<8x128xf32> to vector<1x8x128xf32>
    %cst_15 = arith.constant dense<0.000000e+00> : vector<1xf32>
    %30 = vector.multi_reduction <add>, %29, %cst_15 [1, 2] : vector<1x8x128xf32> to vector<1xf32>
    %31 = vector.shape_cast %30 : vector<1xf32> to vector<1x1x1xf32>
    %32 = vector.extract %31[0, 0, 0] : f32 from vector<1x1x1xf32>
    %33 = vector.broadcast %32 : f32 to vector<1x8x128xf32>
    %c0_16 = arith.constant 0 : index
    %c0_17 = arith.constant 0 : index
    %c0_18 = arith.constant 0 : index
    %34 = vector.load %arg8[%c0_16, %c0_17, %c0_18] : memref<1x8x128xf32, #tpu.memory_space<vmem>>, vector<1x8x128xf32>
    tpu.vector_store %arg8[%c0_16, %c0_17, %c0_18], %33 {strides = array<i32>} : memref<1x8x128xf32, #tpu.memory_space<vmem>>, vector<1x8x128xf32>,
    return
  }
  func.func @transform_0(%arg0: i32) -> (i32, i32) {
    %c0_i32 = arith.constant 0 : i32
    %c0_i32_0 = arith.constant 0 : i32
    return %arg0, %c0_i32 : i32, i32
  }
  func.func @transform_1(%arg0: i32) -> (i32, i32) {
    %c0_i32 = arith.constant 0 : i32
    %c0_i32_0 = arith.constant 0 : i32
    return %arg0, %c0_i32 : i32, i32
  }
  func.func @transform_2(%arg0: i32) -> (i32, i32) {
    %c0_i32 = arith.constant 0 : i32
    %c0_i32_0 = arith.constant 0 : i32
    %c0_i32_1 = arith.constant 0 : i32
    return %c0_i32, %c0_i32_0 : i32, i32
  }
  func.func @transform_3(%arg0: i32) -> (i32, i32) {
    %c0_i32 = arith.constant 0 : i32
    %c0_i32_0 = arith.constant 0 : i32
    %c0_i32_1 = arith.constant 0 : i32
    return %c0_i32, %c0_i32_0 : i32, i32
  }
  func.func @transform_4(%arg0: i32) -> (i32, i32) {
    %c0_i32 = arith.constant 0 : i32
    %c0_i32_0 = arith.constant 0 : i32
    %c0_i32_1 = arith.constant 0 : i32
    return %c0_i32, %c0_i32_0 : i32, i32
  }
  func.func @transform_5(%arg0: i32) -> (i32, i32) {
    %c0_i32 = arith.constant 0 : i32
    %c0_i32_0 = arith.constant 0 : i32
    %c0_i32_1 = arith.constant 0 : i32
    return %c0_i32, %c0_i32_0 : i32, i32
  }
  func.func @transform_6(%arg0: i32) -> (i32, i32) {
    %c0_i32 = arith.constant 0 : i32
    %c0_i32_0 = arith.constant 0 : i32
    return %arg0, %c0_i32 : i32, i32
  }
  func.func @transform_7(%arg0: i32) -> (i32, i32, i32) {
    %c0_i32 = arith.constant 0 : i32
    %c0_i32_0 = arith.constant 0 : i32
    %c0_i32_1 = arith.constant 0 : i32
    return %arg0, %c0_i32, %c0_i32_0 : i32, i32, i32
  }
}

</mosaic_0001>

<bundles_post_ra>
// kernel: fmr_forward.1
= control target key start
LH: loop header
LB: loop body
LE: loop exit
PB: predicated region body
PF: predicated region fallthrough
CT: control target
= control target key end

     0   :  { %v350_v1 = vmov 0.0   ;;  %v351_v3 = vmov 0   ;;  %vm352_vm0 = vmmov 0   ;;  %vm66_vm1 = vcmask 261120   ;;  %s448_s0 = inlined_call_operand.vmem [shape: bf16[8,32], index: 0, kind: input, shape index: {}]   ;;  %s449_s1 = inlined_call_operand.vmem [shape: f32[8,128], index: 1, kind: input, shape index: {}]   ;;  %s450_s2 = inlined_call_operand.vmem [shape: bf16[32,256], index: 2, kind: input, shape index: {}]   ;;  %s451_s3 = inlined_call_operand.vmem [shape: f32[1,256], index: 3, kind: input, shape index: {}]   ;;  %s452_s4 = inlined_call_operand.vmem [shape: bf16[128,128], index: 4, kind: input, shape index: {}]   ;;  %s453_s5 = inlined_call_operand.vmem [shape: f32[1,128], index: 5, kind: input, shape index: {}]   ;;  %s454_s6 = inlined_call_operand.hbm [shape: f32[8,128], index: 6, kind: output, shape index: {0}]   ;;  %s455_s7 = inlined_call_operand.vmem [shape: f32[1,8,128], index: 7, kind: output, shape index: {1}]  }
   0x1   :  { %v314_v0 = vld [vmem:[%s450_s2 + $0x14] ss:$8 sps:$4 sm:$0xff]   ;;  %288 = vmatprep.subr.bf16.mxu1 %v350_v1  ;;  %102 = vmatprep.mubr.bf16.mxu0 %v351_v3  ;;  %v317_v4 = vld [vmem:[%s450_s2 + $0x10] ss:$8 sps:$4 sm:$0xff]   ;;  %v318_v5 = vld [vmem:[%s450_s2 + $0x4] ss:$8 sps:$4 sm:$0xff]  }
   0x2   :  { %v316_v2 = vld [vmem:[%s452_s4 + $0x38] sm:$0xff]   ;;  %82 = vmatprep.subr.bf16.mxu0 %v314_v0  ;;  %304 = vmatprep.mubr.msk.bf16.mxu1 %vm352_vm0, %v350_v1  ;;  %v320_v6 = vld [vmem:[%s452_s4 + $0x30] sm:$0xff]   ;;  %v321_v7 = vld [vmem:[%s450_s2] ss:$8 sps:$4 sm:$0xff]  }
   0x3   :  { %289 = vmatpush3.bf16.msra.mxu1 %v316_v2  ;;  %83 = vmatpush1.bf16.msra.mxu0 %v317_v4  ;;  %v322_v8 = vld [vmem:[%s452_s4 + $0x28] sm:$0xff]   ;;  %v27_v9 = vld [vmem:[%s448_s0] sm:$0xf] }
   0x4   :  { %290 = vmatprep.subr.bf16.mxu1 %v350_v1  ;;  %84 = vmatprep.subr.bf16.mxu0 %v318_v5  ;;  %v323_v10 = vld [vmem:[%s452_s4 + $0x20] sm:$0xff]  }
   0x7   :  { %291 = vmatpush3.bf16.msra.mxu1 %v320_v6  ;;  %85 = vmatpush1.bf16.msra.mxu0 %v321_v7 }
   0x8   :  { %292 = vmatprep.subr.bf16.mxu1 %v350_v1 }
   0xa   :  { %269 = vmatmul.mubr.msk.bf16.vlgmr.msra.gmra.mxu0 %vm66_vm1, %v27_v9 }
   0xb   :  { %293 = vmatpush3.bf16.msra.mxu1 %v322_v8 }
   0xc   :  { %13 = vsyncpa [#allocation3], 0  ;;  %294 = vmatprep.subr.bf16.mxu1 %v350_v1  ;;  %v324_v11 = vld [vmem:[%s452_s4 + $0x18] sm:$0xff]   ;;  %v325_v12 = vld [vmem:[%s452_s4 + $0x10] sm:$0xff]   ;;  %v36_v17 = vlaneseq }
   0xd   :  { %v326_v13 = vld [vmem:[%s452_s4 + $0x8] sm:$0xff]   ;;  %v327_v14 = vld [vmem:[%s452_s4] sm:$0xff]  }
   0xe   :  { %v28_v15 = vld [vmem:[%s449_s1] sm:$0xff]  ;;  %v37_v18 = vshrl.u32 %v36_v17, 7  ;;  %s353_s1 = smov [#allocation2]  }
   0xf   :  { %295 = vmatpush3.bf16.msra.mxu1 %v323_v10  ;;  %v111_v16 = vpack.c.bf16 %v28_v15, %v28_v15  ;;  %v34_v20 = vld [vmem:[%s451_s3] sm:$0x3]  ;;  %s253_s3 = sshll.u32 %s353_s1, 4  ;;  %s254_s3 = int_to_ptr.vmem [resolvable:$true] %s253_s3 }
  0x10   :  { %296 = vmatprep.subr.bf16.mxu1 %v350_v1  ;;  %v38_v19 = vsub.s32 0, %v37_v18  ;;  %v278_v25 = vld [vmem:[%s453_s5] ss:$0 sm:$0xff]  ;;  %v42_v31 = vsub.s32 1, %v37_v18  ;;  %s328_s30 = scalar_lea.vmem %s254_s3, 128  ;;  %p333_p1 = scmp.lt.s32.totalorder %s254_s3, %s254_s3 }
  0x11   :  { %p329_p0 = scmp.ne.s32.totalorder %s254_s3, %s328_s30  ;;  %p334_p2 = scmp.lt.s32.totalorder %s328_s30, %s328_s30 }
  0x12   :  { %v39_v21 = vrot.slane %v34_v20, %v38_v19  ;;  %v43_v32 = vrot.slane %v34_v20, %v42_v31 }
  0x13   :  { %297 = vmatpush3.bf16.msra.mxu1 %v324_v11  ;;  %p335_p3 = por %p334_p2, %p333_p1 }
  0x14   :  { %298 = vmatprep.subr.bf16.mxu1 %v350_v1 }
  0x15   :  { %p336_p4 = pnand %p335_p3, %p329_p0 }
  0x17   :  { %299 = vmatpush3.bf16.msra.mxu1 %v325_v12 }
  0x18   :  { %300 = vmatprep.subr.bf16.mxu1 %v350_v1 }
  0x1b   :  { %301 = vmatpush3.bf16.msra.mxu1 %v326_v13 }
  0x1c   :  { %302 = vmatprep.subr.bf16.mxu1 %v350_v1 }
  0x1f   :  { %303 = vmatpush3.bf16.msra.mxu1 %v327_v14 }
  0x22   :  { %305 = vmatmul.mubr.bf16.vlgmr.msra.gmra.mxu1 %v111_v16 }
  0xca   :  { %v104_v22 = vpop.f32.mrf.mxu0 }
  0xcb   :  { %v105_v23 = vadd.f32 %v104_v22, %v39_v21 }
  0xcc   :  { %v106_v24 = vpop.f32.mrf.mxu0 }
  0xcd   :  { %v218_v26 = vsub.f32 %v28_v15, %v105_v23  ;;  %v107_v33 = vadd.f32 %v106_v24, %v43_v32 }
  0xce   :  { %v108_v27 = vpop.f32.mrf.mxu0 }
  0xcf   :  { %v225_v28 = vmul.f32 %v278_v25, %v218_v26 }
  0xd0   :  { %v109_v29 = vpop.f32.mrf.mxu0 }
  0xd1   :  { %v234_v30 = vmul.f32 %v225_v28, %v225_v28 }
  0xd3   :  { %236 = vadd.xlane.f32.xlu0 %v234_v30 }
  0xe2   :  { %v210_v34 = vpop.f32.mrf.mxu1 }
  0xe3   :  { %v216_v35 = vadd.f32 %v210_v34, %v107_v33 }
  0xe4   :  { %v306_v36 = vpop.f32.mrf.mxu1 }
  0xe5   :  { %217 = vst [vmem:[#allocation2] sm:$0xff] %v216_v35 }
  0xe6   :  { %v213_v37 = vpop.f32.mrf.mxu1 }
  0xe8   :  { %v307_v38 = vpop.f32.mrf.mxu1 }
  0xe9   :  { %339 = shalt.err (!%p336_p4)
}
  0xea   :  { %256 = dma.vmem_to_hbm [thread:$0]  %s254_s3, 128, %s454_s6, [#allocation3]  }
 0x15c   :  { %v237_v39 = vpop.xlane.xlu0 %236 }
 0x15d   :  { %v238_v40 = vrot.slane %v237_v39, 4 }
 0x15f   :  { %v239_v41 = vadd.f32 %v238_v40, %v237_v39 }
 0x161   :  { %v240_v42 = vrot.slane %v239_v41, 2 }
 0x163   :  { %v241_v43 = vadd.f32 %v240_v42, %v239_v41 }
 0x165   :  { %v242_v44 = vrot.slane %v241_v43, 1 }
 0x167   :  { %v243_v45 = vadd.f32 %v242_v44, %v241_v43 }
 0x169   :  { %308 = vpush %v243_v45 }
 0x19a   :  { %s309_s9 = spop %308 }
 0x19b   :  { %v245_v46 = vstv %s309_s9 }
 0x19c   :  { %246 = vst [vmem:[%s455_s7] sm:$0xff] %v245_v46 }
 0x19d   :  { %348 = dma.done.wait [#allocation3], 128  }
 0x19e   :  { %349 = vsyncadd [#allocation3], 4294967168 }
 0x19f   :  { %264 = vsyncpa [#allocation3], 1 }

</bundles_post_ra>
